<compile_context>
chip_gen: v5e
topology: v5e:2x2
jax: 0.10.0
libtpu: 0.0.40
codegen_flags: <defaults>
</compile_context>

<pallas_src>
from functools import partial

import jax
import jax.numpy as jnp
from jax.experimental import pallas as pl
from jax.experimental.pallas import tpu as pltpu

B, N, C = 2, 8, 32          # batch, tokens, channels
NUM_HEADS = 4
HEAD_DIM = C // NUM_HEADS   # 8


def _attention_kernel(x_ref, w_ref, o_ref, *, num_heads, head_dim):
    """One grid step = one batch element.

    x_ref : (N, C)    tokens for this batch element
    w_ref : (C, 3C)   fused [q | k | v] projection weights (Q pre-scaled)
    o_ref : (N, C)    attention output, heads concatenated along channels
    """
    n, c = x_ref.shape

    # Fused QKV projection: a single lane-dense MXU matmul, f32 accumulation.
    qkv = jnp.dot(x_ref[...], w_ref[...],
                  preferred_element_type=jnp.float32)            # (N, 3C)

    # Static lane slices -> head-major stacks (H, N, hd).  The stack only adds a
    # leading (untiled) axis, so it is vreg re-grouping, not a minor-dim reshape.
    def heads(block):
        off = block * c
        return jnp.stack([qkv[:, off + h * head_dim: off + (h + 1) * head_dim]
                          for h in range(num_heads)])

    q = heads(0)   # 1/sqrt(head_dim) already folded into the Q weights
    k = heads(1)
    v = heads(2)

    # Scores + ONE batched softmax over all heads.
    s = jnp.einsum('hqd,hkd->hqk', q, k,
                   preferred_element_type=jnp.float32)           # (H, N, N)
    s = s - jnp.max(s, axis=-1, keepdims=True)
    e = jnp.exp(s)
    p = e * pl.reciprocal(jnp.sum(e, axis=-1, keepdims=True), approx=False)

    o = jnp.einsum('hqk,hkd->hqd', p, v,
                   preferred_element_type=jnp.float32)           # (H, N, hd)

    # Head concat along lanes -> one lane-dense (N, C) store; this is exactly
    # (attn @ v).transpose(1, 2).reshape(B, N, C) for this batch element.
    o_ref[...] = jnp.concatenate([o[h] for h in range(num_heads)],
                                 axis=-1).astype(o_ref.dtype)


def attention(x, wqkv, num_heads=NUM_HEADS):
    """x: (B, N, C). wqkv: (C, 3C) in (in, out) layout, output features ordered
    [q | k | v], each grouped (head, head_dim) — i.e. nn.Linear(C, 3C).weight.T."""
    b, n, c = x.shape
    hd = c // num_heads
    scale = hd ** -0.5

    # Fold 1/sqrt(head_dim) into the Q columns (one-time, wrapper-side).
    w = jnp.concatenate([wqkv[:, :c] * scale, wqkv[:, c:]], axis=1)
    x2d = x.reshape(b * n, c)                       # free reshape (no transpose)

    flops = 2 * b * n * c * 3 * c + 4 * b * num_heads * n * n * hd
    bytes_accessed = 4 * (x2d.size + w.size + b * n * c)

    out2d = pl.pallas_call(
        partial(_attention_kernel, num_heads=num_heads, head_dim=hd),
        out_shape=jax.ShapeDtypeStruct((b * n, c), x.dtype),
        grid=(b,),
        in_specs=[
            pl.BlockSpec((n, c), lambda i: (i, 0)),       # per-batch token tile
            pl.BlockSpec((c, 3 * c), lambda i: (0, 0)),   # weights: resident, DMA'd once
        ],
        out_specs=pl.BlockSpec((n, c), lambda i: (i, 0)),
        compiler_params=pltpu.CompilerParams(
            dimension_semantics=("parallel",)),           # shards batches over TCs on v7x
        cost_estimate=pl.CostEstimate(
            flops=int(flops),
            transcendentals=int(b * num_heads * n * n),
            bytes_accessed=int(bytes_accessed)),
    )(x2d, w)

    return out2d.reshape(b, n, c)                   # free reshape (no transpose)


def reference(x, wqkv, num_heads=NUM_HEADS):
    """Pure-JAX replica of the PyTorch Attention.forward (for correctness)."""
    b, n, c = x.shape
    hd = c // num_heads
    scale = hd ** -0.5
    qkv = (x @ wqkv).reshape(b, n, 3, num_heads, hd)
    qkv = jnp.transpose(qkv, (2, 0, 3, 1, 4))           # (3, B, H, N, hd)
    q, k, v = qkv[0], qkv[1], qkv[2]
    attn = jnp.einsum('bhqd,bhkd->bhqk', q, k) * scale
    attn = jax.nn.softmax(attn, axis=-1)                # attn_drop = 0.0
    out = jnp.einsum('bhqk,bhkd->bhqd', attn, v)        # (B, H, N, hd)
    out = jnp.transpose(out, (0, 2, 1, 3)).reshape(b, n, c)
    return out                                          # proj_drop = 0.0; self.proj unused in forward()


if __name__ == "__main__":
    key = jax.random.PRNGKey(0)
    kx, kw = jax.random.split(key)
    x = jax.random.normal(kx, (B, N, C), jnp.float32)
    wqkv = (0.05 * jax.random.normal(kw, (C, 3 * C))).astype(jnp.float32)

    out = jax.block_until_ready(attention(x, wqkv))
    ref = reference(x, wqkv)

    assert out.shape == (B, N, C)
    assert bool(jnp.allclose(out, ref, atol=2e-3, rtol=2e-3)), "mismatch vs reference"
    print("KERNEL_OK")
</pallas_src>

<mosaic_0001>
module attributes {stable_mosaic.version = 11 : i64} {
  func.func @_attention_kernel(%arg0: i32, %arg1: memref<8x32xf32, #tpu.memory_space<vmem>>, %arg2: memref<32x96xf32, #tpu.memory_space<vmem>>, %arg3: memref<8x32xf32, #tpu.memory_space<vmem>>) attributes {dimension_semantics = [#tpu.dimension_semantics<parallel>], iteration_bounds = array<i64: 2>, scalar_prefetch = 0 : i64, scratch_operands = 0 : i64, tpu.core_type = #tpu.core_type<tc>, window_params = [{transform_indices = @transform_0, window_bounds = array<i64: 8, 32>}, {pipeline_mode = #tpu.pipeline_mode<synchronous>, transform_indices = @transform_1, window_bounds = array<i64: 32, 96>}, {transform_indices = @transform_2, window_bounds = array<i64: 8, 32>}]} {
    %c0 = arith.constant 0 : index
    %c0_0 = arith.constant 0 : index
    %0 = vector.load %arg1[%c0, %c0_0] : memref<8x32xf32, #tpu.memory_space<vmem>>, vector<8x32xf32>
    %c0_1 = arith.constant 0 : index
    %c0_2 = arith.constant 0 : index
    %1 = vector.load %arg2[%c0_1, %c0_2] : memref<32x96xf32, #tpu.memory_space<vmem>>, vector<32x96xf32>
    %cst = arith.constant dense<0.000000e+00> : vector<8x96xf32>
    %2 = tpu.matmul %0, %1, %cst {dimension_numbers = #tpu.dot_dimension_numbers<[1], [0], [0], [1], [0, 0, 1, 1], [], []>} : vector<8x32xf32>, vector<32x96xf32>, vector<8x96xf32> -> vector<8x96xf32>
    %3 = vector.extract_strided_slice %2 {offsets = [0, 0], sizes = [8, 8], strides = [1, 1]} : vector<8x96xf32> to vector<8x8xf32>
    %4 = vector.extract_strided_slice %2 {offsets = [0, 8], sizes = [8, 8], strides = [1, 1]} : vector<8x96xf32> to vector<8x8xf32>
    %5 = vector.extract_strided_slice %2 {offsets = [0, 16], sizes = [8, 8], strides = [1, 1]} : vector<8x96xf32> to vector<8x8xf32>
    %6 = vector.extract_strided_slice %2 {offsets = [0, 24], sizes = [8, 8], strides = [1, 1]} : vector<8x96xf32> to vector<8x8xf32>
    %7 = vector.shape_cast %3 : vector<8x8xf32> to vector<1x8x8xf32>
    %8 = vector.shape_cast %4 : vector<8x8xf32> to vector<1x8x8xf32>
    %9 = vector.shape_cast %5 : vector<8x8xf32> to vector<1x8x8xf32>
    %10 = vector.shape_cast %6 : vector<8x8xf32> to vector<1x8x8xf32>
    %11 = tpu.concatenate %7, %8, %9, %10 in 0 : vector<1x8x8xf32>, vector<1x8x8xf32>, vector<1x8x8xf32>, vector<1x8x8xf32> -> vector<4x8x8xf32>
    %12 = vector.extract_strided_slice %2 {offsets = [0, 32], sizes = [8, 8], strides = [1, 1]} : vector<8x96xf32> to vector<8x8xf32>
    %13 = vector.extract_strided_slice %2 {offsets = [0, 40], sizes = [8, 8], strides = [1, 1]} : vector<8x96xf32> to vector<8x8xf32>
    %14 = vector.extract_strided_slice %2 {offsets = [0, 48], sizes = [8, 8], strides = [1, 1]} : vector<8x96xf32> to vector<8x8xf32>
    %15 = vector.extract_strided_slice %2 {offsets = [0, 56], sizes = [8, 8], strides = [1, 1]} : vector<8x96xf32> to vector<8x8xf32>
    %16 = vector.shape_cast %12 : vector<8x8xf32> to vector<1x8x8xf32>
    %17 = vector.shape_cast %13 : vector<8x8xf32> to vector<1x8x8xf32>
    %18 = vector.shape_cast %14 : vector<8x8xf32> to vector<1x8x8xf32>
    %19 = vector.shape_cast %15 : vector<8x8xf32> to vector<1x8x8xf32>
    %20 = tpu.concatenate %16, %17, %18, %19 in 0 : vector<1x8x8xf32>, vector<1x8x8xf32>, vector<1x8x8xf32>, vector<1x8x8xf32> -> vector<4x8x8xf32>
    %21 = vector.extract_strided_slice %2 {offsets = [0, 64], sizes = [8, 8], strides = [1, 1]} : vector<8x96xf32> to vector<8x8xf32>
    %22 = vector.extract_strided_slice %2 {offsets = [0, 72], sizes = [8, 8], strides = [1, 1]} : vector<8x96xf32> to vector<8x8xf32>
    %23 = vector.extract_strided_slice %2 {offsets = [0, 80], sizes = [8, 8], strides = [1, 1]} : vector<8x96xf32> to vector<8x8xf32>
    %24 = vector.extract_strided_slice %2 {offsets = [0, 88], sizes = [8, 8], strides = [1, 1]} : vector<8x96xf32> to vector<8x8xf32>
    %25 = vector.shape_cast %21 : vector<8x8xf32> to vector<1x8x8xf32>
    %26 = vector.shape_cast %22 : vector<8x8xf32> to vector<1x8x8xf32>
    %27 = vector.shape_cast %23 : vector<8x8xf32> to vector<1x8x8xf32>
    %28 = vector.shape_cast %24 : vector<8x8xf32> to vector<1x8x8xf32>
    %29 = tpu.concatenate %25, %26, %27, %28 in 0 : vector<1x8x8xf32>, vector<1x8x8xf32>, vector<1x8x8xf32>, vector<1x8x8xf32> -> vector<4x8x8xf32>
    "tpu.trace_start"() <{level = 10 : i32, message = "hqd,hkd->hqk"}> : () -> ()
    %cst_3 = arith.constant dense<0.000000e+00> : vector<4x8x8xf32>
    %30 = tpu.matmul %11, %20, %cst_3 {dimension_numbers = #tpu.dot_dimension_numbers<[2], [2], [1], [1], [0, 0, 0, 1, 1, 1], [0], [0]>} : vector<4x8x8xf32>, vector<4x8x8xf32>, vector<4x8x8xf32> -> vector<4x8x8xf32>
    "tpu.trace_stop"() : () -> ()
    %cst_4 = arith.constant dense<0xFF800000> : vector<4x8xf32>
    %31 = vector.multi_reduction <maximumf>, %30, %cst_4 [2] : vector<4x8x8xf32> to vector<4x8xf32>
    %32 = vector.shape_cast %31 : vector<4x8xf32> to vector<4x8x1xf32>
    %33 = vector.broadcast %32 : vector<4x8x1xf32> to vector<4x8x8xf32>
    %34 = arith.subf %30, %33 : vector<4x8x8xf32>
    %35 = math.exp %34 : vector<4x8x8xf32>
    %cst_5 = arith.constant dense<0.000000e+00> : vector<4x8xf32>
    %36 = vector.multi_reduction <add>, %35, %cst_5 [2] : vector<4x8x8xf32> to vector<4x8xf32>
    %37 = vector.shape_cast %36 : vector<4x8xf32> to vector<4x8x1xf32>
    %38 = tpu.reciprocal %37 : vector<4x8x1xf32> -> vector<4x8x1xf32>
    %39 = vector.broadcast %38 : vector<4x8x1xf32> to vector<4x8x8xf32>
    %40 = arith.mulf %35, %39 : vector<4x8x8xf32>
    "tpu.trace_start"() <{level = 10 : i32, message = "hqk,hkd->hqd"}> : () -> ()
    %cst_6 = arith.constant dense<0.000000e+00> : vector<4x8x8xf32>
    %41 = tpu.matmul %40, %29, %cst_6 {dimension_numbers = #tpu.dot_dimension_numbers<[2], [1], [1], [2], [0, 0, 0, 1, 1, 2], [0], [0]>} : vector<4x8x8xf32>, vector<4x8x8xf32>, vector<4x8x8xf32> -> vector<4x8x8xf32>
    "tpu.trace_stop"() : () -> ()
    %42 = vector.extract_strided_slice %41 {offsets = [0, 0, 0], sizes = [1, 8, 8], strides = [1, 1, 1]} : vector<4x8x8xf32> to vector<1x8x8xf32>
    %43 = vector.shape_cast %42 : vector<1x8x8xf32> to vector<8x8xf32>
    %44 = vector.extract_strided_slice %41 {offsets = [1, 0, 0], sizes = [1, 8, 8], strides = [1, 1, 1]} : vector<4x8x8xf32> to vector<1x8x8xf32>
    %45 = vector.shape_cast %44 : vector<1x8x8xf32> to vector<8x8xf32>
    %46 = vector.extract_strided_slice %41 {offsets = [2, 0, 0], sizes = [1, 8, 8], strides = [1, 1, 1]} : vector<4x8x8xf32> to vector<1x8x8xf32>
    %47 = vector.shape_cast %46 : vector<1x8x8xf32> to vector<8x8xf32>
    %48 = vector.extract_strided_slice %41 {offsets = [3, 0, 0], sizes = [1, 8, 8], strides = [1, 1, 1]} : vector<4x8x8xf32> to vector<1x8x8xf32>
    %49 = vector.shape_cast %48 : vector<1x8x8xf32> to vector<8x8xf32>
    %50 = tpu.concatenate %43, %45, %47, %49 in 1 : vector<8x8xf32>, vector<8x8xf32>, vector<8x8xf32>, vector<8x8xf32> -> vector<8x32xf32>
    %c0_7 = arith.constant 0 : index
    %c0_8 = arith.constant 0 : index
    %51 = vector.load %arg3[%c0_7, %c0_8] : memref<8x32xf32, #tpu.memory_space<vmem>>, vector<8x32xf32>
    tpu.vector_store %arg3[%c0_7, %c0_8], %50 {strides = array<i32>} : memref<8x32xf32, #tpu.memory_space<vmem>>, vector<8x32xf32>,
    return
  }
  func.func @transform_0(%arg0: i32) -> (i32, i32) {
    %c0_i32 = arith.constant 0 : i32
    %c0_i32_0 = arith.constant 0 : i32
    return %arg0, %c0_i32 : i32, i32
  }
  func.func @transform_1(%arg0: i32) -> (i32, i32) {
    %c0_i32 = arith.constant 0 : i32
    %c0_i32_0 = arith.constant 0 : i32
    %c0_i32_1 = arith.constant 0 : i32
    return %c0_i32, %c0_i32_0 : i32, i32
  }
  func.func @transform_2(%arg0: i32) -> (i32, i32) {
    %c0_i32 = arith.constant 0 : i32
    %c0_i32_0 = arith.constant 0 : i32
    return %arg0, %c0_i32 : i32, i32
  }
}

</mosaic_0001>

<bundles_post_ra>
// kernel: tpu_custom_call.1
= control target key start
LH: loop header
LB: loop body
LE: loop exit
PB: predicated region body
PF: predicated region fallthrough
CT: control target
= control target key end

     0   :  { %7 = vsyncpa [#allocation3], 0  ;;  %s1089_s0 = inlined_call_operand.hbm [shape: f32[16,32], index: 0, kind: input, shape index: {}]   ;;  %s1090_s1 = inlined_call_operand.hbm [shape: f32[32,96], index: 1, kind: input, shape index: {}]   ;;  %s1091_s2 = inlined_call_operand.hbm [shape: f32[16,32], index: 2, kind: output, shape index: {}]  }
   0x1   :  { %9 = vsyncpa [#allocation3 + $0x1], 0 }
   0x2   :  { %10 = vsyncpa [#allocation6], 0 }
   0x3   :  { %11 = vsyncpa [#allocation4], 0 }
   0x4   :  { %13 = vsyncpa [#allocation4 + $0x1], 0  ;;  %s906_s9 = smov 0   ;;  %s908_s10 = smov 0  }
   0x5   :  { %s910_s11 = smov 0   ;;  %s912_s12 = smov 0  }
   0x6 LB: > { %s108_s15 = sshll.u32 %s1090_s1, 4  ;;  %s930_s16 = sadd.s32 4294967295, %s878_s12   ;;  %s878_s12 = sphi %s912_s12, %s1101_s12   ;;  %s874_s11 = sphi %s910_s11, %s1100_s11   ;;  %s870_s10 = sphi %s908_s10, %s1099_s10   ;;  %s866_s9 = sphi %s906_s9, %s1098_s9   ;;  %s109_s15 = int_to_ptr.hbm [resolvable:$true] %s108_s15 }
   0x7   : > { %p634_p0 = scmp.ge.s32.totalorder %s878_s12, 1  ;;  %p40_p1 = scmp.eq.s32.totalorder %s930_s16, 0 }
   0x8   : > { %p97_p2 = scmp.lt.s32.totalorder %s878_s12, 3  ;;  %s880_s18 = smov [#allocation5]  }
   0x9   : > { %s110_s19 = sshll.u32 %s880_s18, 4  ;;  %s881_s20 = smov 128   ;;  %s111_s19 = int_to_ptr.vmem [resolvable:$true] %s110_s19 }
   0xa   : > { %p935_p3 = pnand %p634_p0, %p97_p2  ;;  %s882_s21 = smov 8  }
   0xb   : > { %s633_s22 = sadd.s32 4294967294, %s878_s12   ;;  %s946_s23 = sadd.s32 1, %s878_s12  }
   0xc   : > { %p668_p4 = pneg %p935_p3  ;;  %s26_s24 = sadd.s32 1, %s874_s11 }
   0xd   : > { %s23_s25 = ssub.s32 %s878_s12, %s946_s23  ;;  %p33_p7 = scmp.ne.s32.totalorder %s874_s11, %s870_s10 }
   0xe   : > { %p669_p6 = pnand %p668_p4, %p40_p1  ;;  %p24_p8 = scmp.eq.s32.totalorder %s23_s25, 0 }
   0xf   : > { %p34_p9 = scmp.eq.s32.totalorder %s878_s12, 0  ;;  %p39_p10 = scmp.ne.s32.totalorder %s870_s10, %s866_s9 }
  0x10   : > { %671 = dma.hbm_to_vmem [thread:$0]  (!%p669_p6), %s109_s15, 512, %s111_s19, [#allocation6], %s881_s20, %s881_s20, %s882_s21  }
  0x11   : > { %p84_p11 = scmp.eq.s32.totalorder %s930_s16, 1  ;;  %p962_p12 = por %p40_p1, %p39_p10 }
  0x12   : > { %s958_s26 = scalar_select %p24_p8, %s874_s11, %s26_s24  }
  0x13   : > { %p966_p13 = por %p84_p11, %p33_p7  ;;  %p90_p0 = scmp.eq.s32.totalorder %s633_s22, 1 }
  0x14   : > { %p35_p2 = por %p34_p9, %p33_p7  ;;  %s124_s29 = sand.u32 1, %s874_s11  }
  0x15   : > { %p971_p4 = por %p90_p0, %p39_p10  ;;  %p681_p6 = scmp.lt.s32.totalorder %s878_s12, 2 }
  0x16   : > { %s637_s3 = sshll.u32 %s124_s29, 3  ;;  %s638_s4 = sshll.u32 %s878_s12, 3 }
  0x17   : > { %s132_s7 = scalar_lea.hbm %s1089_s0, %s638_s4  ;;  %s128_s13 = scalar_lea.vmem [#allocation2], %s637_s3 }
  0x18   : > { %s134_s8 = sshll.u32 %s132_s7, 4  ;;  %s136_s14 = sshll.u32 %s128_s13, 4  ;;  %s135_s8 = int_to_ptr.hbm [resolvable:$true] %s134_s8  ;;  %s137_s14 = int_to_ptr.vmem [resolvable:$true] %s136_s14 }
  0x19   : > { %p980_p8 = pnand %p681_p6, %p35_p2  ;;  %s125_s18 = scalar_lea.sflag [#allocation3], %s124_s29 }
  0x1a   : > { %s778_s19 = sshra.s32 %s135_s8, 4  ;;  %s785_s24 = scalar_lea.hbm %s1089_s0, 16  ;;  %s779_s19 = int_to_ptr.hbm [resolvable:$true] %s778_s19 }
  0x1b   : > { %s780_s20 = scalar_lea.hbm %s779_s19, 8  ;;  %p782_p9 = pneg %p980_p8 }
  0x1c   : > { %p781_p7 = scmp.ne.s32.totalorder %s779_s19, %s780_s20  ;;  %p786_p0 = scmp.lt.s32.totalorder %s779_s19, %s1089_s0 }
  0x1d   : > { %p787_p2 = scmp.lt.s32.totalorder %s785_s24, %s780_s20 }
  0x1e   : > { %p783_p10 = pnand %p782_p9, %p781_p7 }
  0x1f   : > { %p788_p6 = por %p787_p2, %p786_p0 }
  0x20   : > { %p784_p11 = pneg %p783_p10 }
  0x22   : > { %p789_p5 = pnand %p788_p6, %p784_p11 }
  0x24   : > { %792 = shalt.err (!%p789_p5)
}
  0x25   : > { %675 = dma.hbm_to_vmem [thread:$0]  (!%p980_p8), %s135_s8, 128, %s137_s14, %s125_s18  }
  0x26   : > { %145 = sbr.rel (%p935_p3) target bundleno = 1075 (0x433), region = 28  ;;  %s997_s29 = sand.u32 (!%p935_p3), 1, %s870_s10  }
  0x27   : > { %s640_s4 = sshll.u32 (!%p935_p3), %s997_s29, 3  ;;  %s148_s5 = scalar_lea.sflag (!%p935_p3), [#allocation3], %s997_s29 }
  0x28   : > { %s151_s6 = scalar_lea.vmem (!%p935_p3), [#allocation2], %s640_s4 }
  0x2b   : > { %853 = dma.done.wait (%p962_p12), %s148_s5, 128  }
  0x2c   : > { %855 = vsyncadd (%p962_p12), %s148_s5, 4294967168 }
  0x2d   : > { %857 = dma.done.wait (%p40_p1), [#allocation6], 512  }
  0x2e   : > { %859 = vsyncadd (%p40_p1), [#allocation6], 4294966784  ;;  %v182_v0 = vld [vmem:[#allocation5 + $0x18] sm:$0xff]  ;;  %v181_v1 = vld [vmem:[#allocation5 + $0x10] sm:$0xff]  ;;  %vm183_vm0 = vcmask 261120   ;;  %s883_s17 = smov 96  }
  0x2f   : > { %199 = vmatpush.msra.mxu0 %v182_v0  ;;  %v180_v2 = vld [vmem:[#allocation5 + $0x8] sm:$0xff]  ;;  %v179_v3 = vld [vmem:[#allocation5] sm:$0xff]  ;;  %v178_v4 = vld [vmem:[%s151_s6] sm:$0xff]  ;;  %s884_s27 = smov 104   ;;  %s885_s7 = smov 120   ;;  %vm216_vm1 = vcmask 64512  }
  0x30   : > { %s886_s8 = smov 112   ;;  %s887_s13 = smov 64  }
  0x31   : > { %200 = vmatpush.msra.mxu0 %v181_v1  ;;  %s888_s14 = smov 16   ;;  %s889_s15 = smov 8  }
  0x32   : > { %s890_s18 = smov 24   ;;  %s657_s19 = sshll.u32 %s930_s16, 3 }
  0x33   : > { %201 = vmatpush.msra.mxu0 %v180_v2  ;;  %s548_s22 = scalar_lea.hbm %s1091_s2, %s657_s19  ;;  %s177_s24 = scalar_lea.vmem [#allocation7], %s640_s4 }
  0x34   : > { %s550_s25 = sshll.u32 %s177_s24, 4  ;;  %s552_s3 = sshll.u32 %s548_s22, 4  ;;  %s551_s25 = int_to_ptr.vmem [resolvable:$true] %s550_s25  ;;  %s553_s3 = int_to_ptr.hbm [resolvable:$true] %s552_s3 }
  0x35   : > { %202 = vmatpush.msra.mxu0 %v179_v3  ;;  %s538_s16 = scalar_lea.sflag [#allocation4], %s997_s29  ;;  %s822_s5 = sshra.s32 %s553_s3, 4  ;;  %s823_s5 = int_to_ptr.hbm [resolvable:$true] %s822_s5 }
  0x36   : > { %643 = vmatmul.msk.f32.vlgmr.msra.gmra.mxu0 %vm183_vm0, %v178_v4  ;;  %s824_s6 = scalar_lea.hbm %s823_s5, 8  ;;  %p829_p12 = scmp.lt.s32.totalorder %s823_s5, %s1091_s2 }
  0x37   : > { %p825_p1 = scmp.ne.s32.totalorder %s823_s5, %s824_s6 }
  0x39   : > { %p826_p3 = pnand %p825_p1, %p966_p13 }
  0x3b   : > { %p827_p5 = pneg %p826_p3 }
  0xb3   : > { %v1012_v5 = vpop.f32.mrf.mxu0 }
  0xb4   : > { %214 = vrot.lane.b32.xlu2 %v1012_v5, %s883_s17  ;;  %212 = vrot.lane.b32.xlu1 %v1012_v5, %s884_s27  ;;  %s828_s27 = scalar_lea.hbm %s1091_s2, 16 }
  0xb5   : > { %208 = vrot.lane.b32.xlu0 %v1012_v5, %s885_s7  ;;  %p830_p8 = scmp.lt.s32.totalorder %s828_s27, %s824_s6 }
  0xb7   : > { %p831_p7 = por %p830_p8, %p829_p12 }
  0xb9   : > { %p832_p9 = pnand %p831_p7, %p827_p5 }
  0xbd   : > { %210 = vrot.lane.b32.xlu0 %v1012_v5, %s886_s8 }
 0x10e   : > { %v215_v6 = vpop.permute.xlu2 %214 }
 0x10f   : > { %644 = vmatpush.xpose.msk.msra.mxu1 %vm216_vm1, %v215_v6 }
 0x112   : > { %645 = vmatmul.msk.f32.vlgmr.msra.gmra.mxu1 %vm216_vm1, %v1012_v5 }
 0x126   : > { %v213_v7 = vpop.permute.xlu1 %212 }
 0x127   : > { %v209_v8 = vpop.permute.xlu0 %208  ;;  %293 = vrot.lane.b32.xlu0 %v213_v7, %s883_s17 }
 0x128   : > { %241 = vrot.lane.b32.xlu1 %v209_v8, %s883_s17 }
 0x12f   : > { %v211_v9 = vpop.permute.xlu0 %210 }
 0x130   : > { %267 = vrot.lane.b32.xlu2 %v211_v9, %s883_s17  ;;  %v727_v41 = vpack.i.bf16 %v213_v7, %v211_v9 }
 0x18a   : > { %v268_v10 = vpop.permute.xlu2 %267 }
 0x18b   : > { %648 = vmatpush.xpose.msk.msra.mxu3 %vm216_vm1, %v268_v10 }
 0x18e   : > { %649 = vmatmul.msk.f32.vlgmr.msra.gmra.mxu3 %vm216_vm1, %v211_v9 }
 0x18f   : > { %v238_v14 = vpop.f32.mrf.mxu1 }
 0x190   : > { %v319_v17 = vsel %vm216_vm1, %v238_v14, -inf }
 0x199   : > { %v294_v11 = vpop.permute.xlu0 %293 }
 0x19a   : > { %v242_v12 = vpop.permute.xlu1 %241  ;;  %650 = vmatpush.xpose.msk.msrb.mxu1 %vm216_vm1, %v294_v11 }
 0x19b   : > { %646 = vmatpush.xpose.msk.msra.mxu2 %vm216_vm1, %v242_v12 }
 0x19d   : > { %651 = vmatmul.msk.f32.vlgmr.msrb.gmra.mxu1 %vm216_vm1, %v213_v7 }
 0x19e   : > { %647 = vmatmul.msk.f32.vlgmr.msra.gmra.mxu2 %vm216_vm1, %v209_v8 }
 0x211   : > { %v290_v13 = vpop.f32.mrf.mxu3 }
 0x212   : > { %v325_v15 = vsel %vm216_vm1, %v290_v13, -inf }
 0x213   : > { %326 = vmax.xlane.f32.xlu2 %v325_v15 }
 0x21a   : > { %v316_v16 = vpop.f32.mrf.mxu1 }
 0x21b   : > { %320 = vmax.xlane.f32.xlu2 %v319_v17  ;;  %v328_v18 = vsel %vm216_vm1, %v316_v16, -inf }
 0x21c   : > { %329 = vmax.xlane.f32.xlu0 %v328_v18 }
 0x221   : > { %v264_v19 = vpop.f32.mrf.mxu2 }
 0x222   : > { %v322_v20 = vsel %vm216_vm1, %v264_v19, -inf }
 0x223   : > { %323 = vmax.xlane.f32.xlu1 %v322_v20 }
 0x286   : > { %v327_v21 = vpop.xlane.xlu2 %326 }
 0x287   : > { %v333_v22 = vsub.f32 %v290_v13, %v327_v21 }
 0x289   : > { %v339_v23 = vmul.f32 1.442695, %v333_v22 }
 0x28b   : > { %732 = vpow2.f32 %v339_v23 }
 0x28e   : > { %v321_v24 = vpop.xlane.xlu2 %320 }
 0x28f   : > { %v330_v25 = vpop.xlane.xlu0 %329  ;;  %v331_v28 = vsub.f32 %v238_v14, %v321_v24 }
 0x290   : > { %v334_v26 = vsub.f32 %v316_v16, %v330_v25 }
 0x291   : > { %v733_v27 = vpop.eup %732  ;;  %v335_v31 = vmul.f32 1.442695, %v331_v28 }
 0x292   : > { %v341_v29 = vmul.f32 1.442695, %v334_v26  ;;  %v349_v30 = vsel %vm216_vm1, %v733_v27, 0.0 }
 0x293   : > { %350 = vadd.xlane.f32.xlu2 %v349_v30 }
 0x294   : > { %734 = vpow2.f32 %v341_v29 }
 0x295   : > { %736 = vpow2.f32 %v335_v31 }
 0x296   : > { %v324_v32 = vpop.xlane.xlu1 %323 }
 0x297   : > { %v332_v33 = vsub.f32 %v264_v19, %v324_v32 }
 0x299   : > { %v337_v34 = vmul.f32 1.442695, %v332_v33 }
 0x29a   : > { %v1032_v35 = vpop.eup %734 }
 0x29b   : > { %738 = vpow2.f32 %v337_v34  ;;  %v352_v36 = vsel %vm216_vm1, %v1032_v35, 0.0  ;;  %v1036_v37 = vpop.eup %736 }
 0x29c   : > { %353 = vadd.xlane.f32.xlu0 %v352_v36  ;;  %v343_v40 = vsel %vm216_vm1, %v1036_v37, 0.0 }
 0x2a1   : > { %v1038_v38 = vpop.eup %738 }
 0x2a2   : > { %v346_v39 = vsel %vm216_vm1, %v1038_v38, 0.0 }
 0x2a3   : > { %347 = vadd.xlane.f32.xlu1 %v346_v39 }
 0x2a4   : > { %344 = vadd.xlane.f32.xlu0 %v343_v40 }
 0x2ab   : > { %728 = vrot.lane.b32.xlu2 %v727_v41, %s887_s13 }
 0x2b8   : > { %415 = vrot.lane.b32.xlu0 %v1012_v5, %s887_s13 }
 0x2bc   : > { %441 = vrot.lane.b32.xlu1 %v209_v8, %s887_s13 }
 0x306   : > { %v351_v42 = vpop.xlane.xlu2 %350 }
 0x307   : > { %740 = vrcp.f32 %v351_v42  ;;  %v394_v51 = vand.u32 2147483648, %v351_v42  ;;  %vm388_vm3 = vweird.f32 %v351_v42  ;;  %v392_v53 = vand.u32 2147483647, %v351_v42 }
 0x309   : > { %v395_v57 = vor.u32 1.1754944e-38, %v394_v51  ;;  %vm393_vm5 = vcmp.eq.f32.partialorder %v392_v53, 8.507059e+37 }
 0x30d   : > { %v741_v43 = vpop.eup %740 }
 0x30e   : > { %v384_v44 = vmul.f32 %v741_v43, %v351_v42  ;;  %v729_v45 = vpop.permute.xlu2 %728  ;;  %vm389_vm2 = vweird.f32 %v741_v43 }
 0x30f   : > { %v731_v46 = vunpack.i.h.bf16 %v729_v45  ;;  %v354_v47 = vpop.xlane.xlu0 %353  ;;  %v730_v48 = vunpack.i.l.bf16 %v729_v45  ;;  %vm390_vm4 = vmor %vm388_vm3, %vm389_vm2 }
 0x310   : > { %v385_v49 = vsub.f32 1.0, %v384_v44  ;;  %742 = vrcp.f32 %v354_v47  ;;  %v408_v62 = vand.u32 2147483648, %v354_v47  ;;  %v406_v1 = vand.u32 2147483647, %v354_v47 }
 0x311   : > { %488 = vmatpush.msrb.mxu0 %v730_v48  ;;  %514 = vmatpush.msra.mxu1 %v731_v46  ;;  %vm402_vm7 = vweird.f32 %v354_v47 }
 0x312   : > { %v386_v50 = vmul.f32 %v741_v43, %v385_v49  ;;  %v409_v5 = vor.u32 1.1754944e-38, %v408_v62  ;;  %vm407_vm9 = vcmp.eq.f32.partialorder %v406_v1, 8.507059e+37 }
 0x314   : > { %v387_v52 = vadd.f32 %v741_v43, %v386_v50 }
 0x316   : > { %v743_v54 = vpop.eup %742  ;;  %v348_v55 = vpop.xlane.xlu1 %347  ;;  %v391_v56 = vsel %vm390_vm4, %v741_v43, %v387_v52  ;;  %vm532_vm4 = vcmask 130048  }
 0x317   : > { %v398_v58 = vmul.f32 %v743_v54, %v354_v47  ;;  %744 = vrcp.f32 %v348_v55  ;;  %v345_v59 = vpop.xlane.xlu0 %344  ;;  %v396_v61 = vsel %vm393_vm5, %v395_v57, %v391_v56  ;;  %vm403_vm6 = vweird.f32 %v743_v54 }
 0x318   : > { %746 = vrcp.f32 %v345_v59  ;;  %v413_v63 = vmul.f32 %v733_v27, %v396_v61  ;;  %vm404_vm8 = vmor %vm402_vm7, %vm403_vm6  ;;  %v366_v14 = vand.u32 2147483648, %v345_v59  ;;  %v364_v16 = vand.u32 2147483647, %v345_v59 }
 0x319   : > { %v399_v60 = vsub.f32 1.0, %v398_v58  ;;  %v380_v18 = vand.u32 2147483648, %v348_v55  ;;  %vm360_vm12 = vweird.f32 %v345_v59  ;;  %vm374_vm13 = vweird.f32 %v348_v55 }
 0x31a   : > { %654 = vmatmul.msk.f32.vlgmr.msrb.gmra.mxu0 %vm216_vm1, %v413_v63  ;;  %v378_v20 = vand.u32 2147483647, %v348_v55  ;;  %v367_v21 = vor.u32 1.1754944e-38, %v366_v14  ;;  %vm365_vm2 = vcmp.eq.f32.partialorder %v364_v16, 8.507059e+37  ;;  %vm534_vm5 = vcmask 195584  }
 0x31b   : > { %v400_v0 = vmul.f32 %v743_v54, %v399_v60  ;;  %v381_v25 = vor.u32 1.1754944e-38, %v380_v18 }
 0x31c   : > { %vm379_vm3 = vcmp.eq.f32.partialorder %v378_v20, 8.507059e+37 }
 0x31d   : > { %v745_v2 = vpop.eup %744  ;;  %v401_v3 = vadd.f32 %v743_v54, %v400_v0 }
 0x31e   : > { %v747_v4 = vpop.eup %746  ;;  %v370_v6 = vmul.f32 %v745_v2, %v348_v55  ;;  %vm375_vm11 = vweird.f32 %v745_v2 }
 0x31f   : > { %v405_v7 = vsel %vm404_vm8, %v743_v54, %v401_v3  ;;  %v356_v8 = vmul.f32 %v747_v4, %v345_v59  ;;  %vm361_vm10 = vweird.f32 %v747_v4  ;;  %vm376_vm15 = vmor %vm374_vm13, %vm375_vm11 }
 0x320   : > { %v410_v9 = vsel %vm407_vm9, %v409_v5, %v405_v7  ;;  %v371_v10 = vsub.f32 1.0, %v370_v6  ;;  %vm362_vm14 = vmor %vm360_vm12, %vm361_vm10 }
 0x321   : > { %v357_v11 = vsub.f32 1.0, %v356_v8  ;;  %v414_v12 = vmul.f32 %v1032_v35, %v410_v9 }
 0x322   : > { %v372_v13 = vmul.f32 %v745_v2, %v371_v10 }
 0x323   : > { %v358_v15 = vmul.f32 %v747_v4, %v357_v11  ;;  %655 = vmatmul.msk.f32.vlgmr.msra.gmra.mxu1 %vm216_vm1, %v414_v12 }
 0x324   : > { %v373_v17 = vadd.f32 %v745_v2, %v372_v13 }
 0x325   : > { %v359_v19 = vadd.f32 %v747_v4, %v358_v15 }
 0x326   : > { %v377_v24 = vsel %vm376_vm15, %v745_v2, %v373_v17 }
 0x327   : > { %v363_v22 = vsel %vm362_vm14, %v747_v4, %v359_v19  ;;  %v382_v28 = vsel %vm379_vm3, %v381_v25, %v377_v24 }
 0x328   : > { %v368_v23 = vsel %vm365_vm2, %v367_v21, %v363_v22  ;;  %v412_v30 = vmul.f32 %v1038_v38, %v382_v28 }
 0x329   : > { %v411_v26 = vmul.f32 %v1036_v37, %v368_v23 }
 0x32a   : > { %v416_v27 = vpop.permute.xlu0 %415 }
 0x32b   : > { %436 = vmatpush.msrb.mxu2 %v416_v27 }
 0x32c   : > { %652 = vmatmul.msk.f32.vlgmr.msrb.gmra.mxu2 %vm216_vm1, %v411_v26 }
 0x32e   : > { %v442_v29 = vpop.permute.xlu1 %441 }
 0x32f   : > { %462 = vmatpush.msrb.mxu3 %v442_v29 }
 0x330   : > { %653 = vmatmul.msk.f32.vlgmr.msrb.gmra.mxu3 %vm216_vm1, %v412_v30 }
 0x397   : > { %v490_v31 = vpop.f32.mrf.mxu0 }
 0x398   : > { %524 = vrot.lane.b32.xlu2 %v490_v31, %s888_s14 }
 0x3a0   : > { %v516_v33 = vpop.f32.mrf.mxu1 }
 0x3af   : > { %v438_v35 = vpop.f32.mrf.mxu2 }
 0x3b3   : > { %v464_v32 = vpop.f32.mrf.mxu3 }
 0x3b4   : > { %520 = vrot.lane.b32.xlu1 %v464_v32, %s889_s15 }
 0x3bc   : > { %528 = vrot.lane.b32.xlu1 %v516_v33, %s890_s18 }
 0x3f2   : > { %v525_v37 = vpop.permute.xlu2 %524 }
 0x426   : > { %v521_v34 = vpop.permute.xlu1 %520 }
 0x427   : > { %v531_v36 = vsel %vm216_vm1, %v438_v35, %v521_v34 }
 0x428   : > { %v533_v39 = vsel %vm532_vm4, %v531_v36, %v525_v37 }
 0x42e   : > { %v529_v38 = vpop.permute.xlu1 %528 }
 0x42f   : > { %v535_v40 = vsel %vm534_vm5, %v533_v39, %v529_v38 }
 0x430   : > { %536 = vst.msk [vmem:[%s177_s24] sm:$0xff] %vm183_vm0, %v535_v40 }
 0x431   : > { %835 = shalt.err (!%p832_p9)
}
 0x432   : > { %666 = dma.vmem_to_hbm [thread:$0]  (%p966_p13), %s551_s25, 128, %s553_s3, %s538_s16  }
 0x433 PF: > { %s564_s29 = sand.u32 1, %s866_s9   ;;  %p1097_p10 = scmp.ge.s32.totalorder %s878_s12, 2 }
 0x434   : > { %s565_s13 = scalar_lea.sflag [#allocation4], %s564_s29 }
 0x435   : > { %p677_p11 = pnand %p1097_p10, %p971_p4 }
 0x437   : > { %p678_p0 = pneg %p677_p11 }
 0x439   : > { %861 = dma.done.wait (%p678_p0), %s565_s13, 128  }
 0x43a   : > { %863 = vsyncadd (%p678_p0), %s565_s13, 4294967168  ;;  %p16_p2 = scmp.ge.s32.totalorder %s946_s23, 4   ;;  %s1098_s9 = smov %s870_s10 }
 0x43b   : > { %s1099_s10 = smov %s874_s11  ;;  %s1100_s11 = smov %s958_s26 }
 0x43c   : > { %s1101_s12 = smov %s946_s23  ;;  %18 = sbr.rel (!%p16_p2) target bundleno = 6 (0x6), region = 77 }
 0x441   :  { %571 = vsyncpa [#allocation3], 1 }
 0x442   :  { %573 = vsyncpa [#allocation3 + $0x1], 1 }
 0x443   :  { %574 = vsyncpa [#allocation6], 1 }
 0x444   :  { %575 = vsyncpa [#allocation4], 1 }
 0x445   :  { %577 = vsyncpa [#allocation4 + $0x1], 1 }

</bundles_post_ra>
